<compile_context>
chip_gen: v5e
topology: v5e:2x2
jax: 0.10.0
libtpu: 0.0.40
codegen_flags: <defaults>
</compile_context>

<pallas_src>
import functools

import jax
import jax.numpy as jnp
from jax import lax
from jax.experimental import pallas as pl
from jax.experimental.pallas import tpu as pltpu


def _pick_kv_tile(seq_len: int, cap: int = 128) -> int:
    """Largest KV tile <= cap that divides seq_len and respects the (8, 128) layout rule."""
    if seq_len <= cap:
        return seq_len                      # block == full dim is always legal
    for t in range(cap, 0, -8):             # multiples of 8 only
        if seq_len % t == 0:
            return t
    return seq_len                          # fallback: whole sequence as one block


def _step_vmem_bytes(tq, tkv, hidden, in_bytes, out_bytes, num_heads):
    """Rough per-step VMEM footprint (double-buffered I/O + scratch)."""
    buf = 2 * (tq + 2 * tkv) * hidden * in_bytes        # q, k, v blocks (x2 buffers)
    buf += 2 * tq * hidden * out_bytes                  # output block (x2 buffers)
    buf += tq * hidden * 4                              # f32 accumulator scratch
    buf += 2 * tq * max(num_heads, 128) * 4             # m, l scratch (lane-padded)
    return buf


def _pick_tiles(seq_len, hidden, in_bytes, out_bytes, num_heads,
                max_q_tile=256, vmem_budget=24 * (1 << 20)):
    """KV tile <= 128; query tile a multiple of it, as large as budget/cap allow."""
    tkv = _pick_kv_tile(seq_len, cap=128)
    tq = tkv
    max_k = min(max(max_q_tile // tkv, 1), seq_len // tkv)
    for k in range(max_k, 0, -1):
        cand = k * tkv
        if seq_len % cand == 0 and _step_vmem_bytes(
                cand, tkv, hidden, in_bytes, out_bytes, num_heads) <= vmem_budget:
            tq = cand
            break
    return tq, tkv


def _sliding_window_attn_kernel(q_ref, k_ref, v_ref, o_ref,
                                m_ref, l_ref, acc_ref,
                                *, window, num_heads, head_dim,
                                tq, tkv, c, n_side, num_kv_blocks):
    """One (batch, query-tile) program step over one relative KV block.

    Ref shapes (size-1 batch dim squeezed by the BlockSpec):
      q_ref: (tq, hidden)   k_ref/v_ref: (tkv, hidden)   o_ref: (tq, hidden)
      m_ref/l_ref: (tq, num_heads) f32 scratch           acc_ref: (tq, hidden) f32 scratch
    """
    qi = pl.program_id(1)           # query-tile index
    r = pl.program_id(2)            # relative KV-block index (reduction axis)
    n_rel = pl.num_programs(2)

    @pl.when(r == 0)
    def _init():
        m_ref[...] = jnp.full(m_ref.shape, -1e30, dtype=jnp.float32)
        l_ref[...] = jnp.zeros(l_ref.shape, dtype=jnp.float32)
        acc_ref[...] = jnp.zeros(acc_ref.shape, dtype=jnp.float32)

    intended = qi * c + r - n_side
    block_valid = jnp.logical_and(intended >= 0, intended < num_kv_blocks)

    @pl.when(block_valid)           # skip clamped out-of-range boundary blocks entirely
    def _compute():
        kv_blk = jnp.maximum(jnp.minimum(intended, num_kv_blocks - 1), 0)

        # Per-tile band mask from a single (tq, tkv) iota pair (no (S, S) temporaries).
        rows = qi * tq + lax.broadcasted_iota(jnp.int32, (tq, tkv), 0)
        cols = kv_blk * tkv + lax.broadcasted_iota(jnp.int32, (tq, tkv), 1)
        maskf = (jnp.abs(rows - cols) <= window).astype(jnp.float32)

        # Lane-dense loads of the full hidden dim (all heads at once), kept in the input
        # dtype so bf16 inputs feed the bf16 MXU path (f32 acc via preferred_element_type).
        q = q_ref[...]
        k = k_ref[...]
        v = v_ref[...]
        m_prev_all = m_ref[...]
        l_prev_all = l_ref[...]
        acc_prev_all = acc_ref[...]

        # Small static head loop (num_heads is small here).
        # TODO(synk): for num_heads >= 8 switch to lax.fori_loop + pl.ds to bound live ranges.
        m_cols, l_cols, acc_cols = [], [], []
        for h in range(num_heads):
            sl = slice(h * head_dim, (h + 1) * head_dim)
            # QK^T restricted to this KV block (contraction over head_dim, no explicit .T).
            s = lax.dot_general(q[:, sl], k[:, sl],
                                dimension_numbers=(((1,), (1,)), ((), ())),
                                preferred_element_type=jnp.float32)     # (tq, tkv) f32

            # Online (flash-style) softmax update — no jnp.where on s: the running max may
            # include out-of-band scores, the final acc/l ratio is invariant to that offset,
            # and `* maskf` produces exact zeros outside the band.
            m_prev = m_prev_all[:, h:h + 1]
            m_new = jnp.maximum(m_prev, jnp.max(s, axis=-1, keepdims=True))
            alpha = jnp.exp(m_prev - m_new)
            p = jnp.exp(s - m_new) * maskf

            m_cols.append(m_new)
            l_cols.append(alpha * l_prev_all[:, h:h + 1]
                          + jnp.sum(p, axis=-1, keepdims=True))
            acc_cols.append(alpha * acc_prev_all[:, sl]
                            + jnp.dot(p.astype(v.dtype), v[:, sl],
                                      preferred_element_type=jnp.float32))

        # Single batched store per scratch buffer (no per-head 1-lane masked stores).
        m_ref[...] = jnp.concatenate(m_cols, axis=1)
        l_ref[...] = jnp.concatenate(l_cols, axis=1)
        acc_ref[...] = jnp.concatenate(acc_cols, axis=1)

    @pl.when(r == n_rel - 1)
    def _finalize():
        acc = acc_ref[...]
        inv = 1.0 / l_ref[...]          # exact divide (small (tq, H) tensor, one-time)
        out_cols = [acc[:, h * head_dim:(h + 1) * head_dim] * inv[:, h:h + 1]
                    for h in range(num_heads)]
        o_ref[...] = jnp.concatenate(out_cols, axis=1).astype(o_ref.dtype)   # lane-dense store


def sparse_attention(query, key, value, *, attention_window, hidden_size, num_heads,
                     mask=None, compute_dtype=None):
    """Forward pass of SparseAttention. query/key/value: (B, S, hidden_size).

    compute_dtype: optionally cast q/k/v (e.g. to jnp.bfloat16) before the kernel; the
    kernel still accumulates in f32 and the result is cast back to query's dtype.
    """
    batch_size, seq_len, hid = query.shape
    if hid != hidden_size:
        raise ValueError("hidden_size mismatch")
    if seq_len % (attention_window * 2) != 0:
        raise ValueError("Sequence length must be a multiple of attention window size")
    if hidden_size % num_heads != 0:
        raise ValueError("hidden_size must be divisible by num_heads")
    head_dim = hidden_size // num_heads

    # TODO(synk): optional `mask` (per-token attention mask) not applied.

    out_dtype = query.dtype
    if compute_dtype is not None:
        query = query.astype(compute_dtype)
        key = key.astype(compute_dtype)
        value = value.astype(compute_dtype)

    in_bytes = jnp.dtype(query.dtype).itemsize
    tq, tkv = _pick_tiles(seq_len, hidden_size, in_bytes, in_bytes, num_heads)
    c = tq // tkv
    num_q_blocks = seq_len // tq
    num_kv_blocks = seq_len // tkv
    n_side = min(-(-attention_window // tkv), num_kv_blocks - 1)   # ceil(W/tkv), capped
    n_rel = c + 2 * n_side

    kernel = functools.partial(
        _sliding_window_attn_kernel,
        window=attention_window, num_heads=num_heads, head_dim=head_dim,
        tq=tq, tkv=tkv, c=c, n_side=n_side, num_kv_blocks=num_kv_blocks)

    def q_map(b, qi, r):
        return (b, qi, 0)

    def kv_map(b, qi, r):
        kv = qi * c + r - n_side
        kv = jnp.maximum(jnp.minimum(kv, num_kv_blocks - 1), 0)   # clamp; kernel skips invalid
        return (b, kv, 0)

    def o_map(b, qi, r):
        return (b, qi, 0)            # constant across r -> resident accumulator output

    # Banded (not dense O(S^2)) cost estimate for the XLA scheduler.
    wcols = min(2 * attention_window + 1, seq_len)
    cost = pl.CostEstimate(
        flops=int(4 * batch_size * seq_len * wcols * hidden_size),
        transcendentals=int(batch_size * seq_len * wcols * num_heads),
        bytes_accessed=int(in_bytes * (2 * batch_size * seq_len * hidden_size
                                       + 2 * batch_size * num_q_blocks * n_rel
                                       * tkv * hidden_size)))

    step_bytes = _step_vmem_bytes(tq, tkv, hidden_size, in_bytes, in_bytes, num_heads)
    vmem_limit = int(min(64 * (1 << 20), max(32 * (1 << 20), 2 * step_bytes)))

    out = pl.pallas_call(
        kernel,
        out_shape=jax.ShapeDtypeStruct((batch_size, seq_len, hidden_size), query.dtype),
        grid_spec=pltpu.PrefetchScalarGridSpec(
            num_scalar_prefetch=0,
            grid=(batch_size, num_q_blocks, n_rel),
            in_specs=[
                pl.BlockSpec((pl.Squeezed(), tq, hidden_size), q_map),
                pl.BlockSpec((pl.Squeezed(), tkv, hidden_size), kv_map),
                pl.BlockSpec((pl.Squeezed(), tkv, hidden_size), kv_map),
            ],
            out_specs=pl.BlockSpec((pl.Squeezed(), tq, hidden_size), o_map),
            scratch_shapes=[
                pltpu.VMEM((tq, num_heads), jnp.float32),     # running max m
                pltpu.VMEM((tq, num_heads), jnp.float32),     # running sum l
                pltpu.VMEM((tq, hidden_size), jnp.float32),   # f32 accumulator
            ],
        ),
        compiler_params=pltpu.CompilerParams(
            dimension_semantics=("parallel", "parallel", "arbitrary"),
            vmem_limit_bytes=vmem_limit),
        cost_estimate=cost,
    )(query, key, value)
    return out.astype(out_dtype)


def _reference(query, key, value, *, attention_window, hidden_size, num_heads):
    """Pure-JAX dense reference of the same sliding-window attention (sanity check)."""
    B, S, _ = query.shape
    Dh = hidden_size // num_heads
    rs = lambda x: x.reshape(B, S, num_heads, Dh).transpose(0, 2, 1, 3)
    q, k, v = rs(query), rs(key), rs(value)
    s = jnp.einsum("bhqd,bhkd->bhqk", q.astype(jnp.float32), k.astype(jnp.float32))
    idx = jnp.arange(S)
    band = jnp.abs(idx[:, None] - idx[None, :]) <= attention_window
    s = jnp.where(band[None, None], s, -1e30)
    p = jax.nn.softmax(s, axis=-1)
    o = jnp.einsum("bhqk,bhkd->bhqd", p, v.astype(jnp.float32))
    return o.transpose(0, 2, 1, 3).reshape(B, S, hidden_size)


if __name__ == "__main__":
    root = jax.random.PRNGKey(0)

    # (B, S, hidden, heads, window, dtype, tolerance):
    #   - small shape from the module (single tile),
    #   - longer sequence exercising the decoupled banded path (tq=256, tkv=128),
    #   - same shape with bf16 operands (fast MXU / half the KV stream bytes).
    cases = [
        (2, 8, 32, 4, 2, jnp.float32, 2e-3),
        (1, 256, 32, 4, 16, jnp.float32, 2e-3),
        (1, 256, 32, 4, 16, jnp.bfloat16, 2e-2),
    ]

    for (B, S, HID, HEADS, W, dtype, tol) in cases:
        root, kq, kk, kv = jax.random.split(root, 4)
        query = jax.random.normal(kq, (B, S, HID), dtype=jnp.float32)
        key = jax.random.normal(kk, (B, S, HID), dtype=jnp.float32)
        value = jax.random.normal(kv, (B, S, HID), dtype=jnp.float32)
        if dtype != jnp.float32:
            # Round inputs to the compute dtype so the comparison isolates kernel error.
            query = query.astype(dtype)
            key = key.astype(dtype)
            value = value.astype(dtype)

        out = sparse_attention(query, key, value,
                               attention_window=W, hidden_size=HID, num_heads=HEADS)
        out = jax.block_until_ready(out)

        ref = _reference(query.astype(jnp.float32), key.astype(jnp.float32),
                         value.astype(jnp.float32),
                         attention_window=W, hidden_size=HID, num_heads=HEADS)
        assert out.shape == (B, S, HID)
        assert out.dtype == dtype
        assert jnp.allclose(out.astype(jnp.float32), ref, atol=tol, rtol=tol), \
            float(jnp.max(jnp.abs(out.astype(jnp.float32) - ref)))

    print("KERNEL_OK")
</pallas_src>

<mosaic_0001>
module attributes {stable_mosaic.version = 11 : i64} {
  func.func @_sliding_window_attn_kernel(%arg0: i32, %arg1: i32, %arg2: i32, %arg3: memref<1x8x32xf32, #tpu.memory_space<vmem>>, %arg4: memref<1x8x32xf32, #tpu.memory_space<vmem>>, %arg5: memref<1x8x32xf32, #tpu.memory_space<vmem>>, %arg6: memref<1x8x32xf32, #tpu.memory_space<vmem>>, %arg7: memref<8x4xf32, #tpu.memory_space<vmem>>, %arg8: memref<8x4xf32, #tpu.memory_space<vmem>>, %arg9: memref<8x32xf32, #tpu.memory_space<vmem>>) attributes {dimension_semantics = [#tpu.dimension_semantics<parallel>, #tpu.dimension_semantics<parallel>, #tpu.dimension_semantics<arbitrary>], iteration_bounds = array<i64: 2, 1, 1>, scalar_prefetch = 0 : i64, scratch_operands = 3 : i64, tpu.core_type = #tpu.core_type<tc>, window_params = [{transform_indices = @transform_0, window_bounds = array<i64: 1, 8, 32>}, {transform_indices = @transform_1, window_bounds = array<i64: 1, 8, 32>}, {transform_indices = @transform_2, window_bounds = array<i64: 1, 8, 32>}, {transform_indices = @transform_3, window_bounds = array<i64: 1, 8, 32>}]} {
    %c0_i32 = arith.constant 0 : i32
    %0 = arith.cmpi eq, %arg2, %c0_i32 : i32
    %1 = arith.extui %0 : i1 to i32
    %c0_i32_0 = arith.constant 0 : i32
    %2 = arith.cmpi ne, %1, %c0_i32_0 : i32
    scf.if %2 {
      %cst = arith.constant -1.000000e+30 : f32
      %14 = vector.broadcast %cst : f32 to vector<8x4xf32>
      %c0 = arith.constant 0 : index
      %c0_7 = arith.constant 0 : index
      %15 = vector.load %arg7[%c0, %c0_7] : memref<8x4xf32, #tpu.memory_space<vmem>>, vector<8x4xf32>
      tpu.vector_store %arg7[%c0, %c0_7], %14 {strides = array<i32>} : memref<8x4xf32, #tpu.memory_space<vmem>>, vector<8x4xf32>,
      %cst_8 = arith.constant 0.000000e+00 : f32
      %16 = vector.broadcast %cst_8 : f32 to vector<8x4xf32>
      %c0_9 = arith.constant 0 : index
      %c0_10 = arith.constant 0 : index
      %17 = vector.load %arg8[%c0_9, %c0_10] : memref<8x4xf32, #tpu.memory_space<vmem>>, vector<8x4xf32>
      tpu.vector_store %arg8[%c0_9, %c0_10], %16 {strides = array<i32>} : memref<8x4xf32, #tpu.memory_space<vmem>>, vector<8x4xf32>,
      %cst_11 = arith.constant 0.000000e+00 : f32
      %18 = vector.broadcast %cst_11 : f32 to vector<8x32xf32>
      %c0_12 = arith.constant 0 : index
      %c0_13 = arith.constant 0 : index
      %19 = vector.load %arg9[%c0_12, %c0_13] : memref<8x32xf32, #tpu.memory_space<vmem>>, vector<8x32xf32>
      tpu.vector_store %arg9[%c0_12, %c0_13], %18 {strides = array<i32>} : memref<8x32xf32, #tpu.memory_space<vmem>>, vector<8x32xf32>,
    } else {
    }
    %c1_i32 = arith.constant 1 : i32
    %3 = arith.muli %arg1, %c1_i32 : i32
    %4 = arith.addi %3, %arg2 : i32
    %c0_i32_1 = arith.constant 0 : i32
    %5 = arith.subi %4, %c0_i32_1 : i32
    %c0_i32_2 = arith.constant 0 : i32
    %6 = arith.cmpi sge, %5, %c0_i32_2 : i32
    %c1_i32_3 = arith.constant 1 : i32
    %7 = arith.cmpi slt, %5, %c1_i32_3 : i32
    %8 = arith.andi %6, %7 : i1
    %9 = arith.extui %8 : i1 to i32
    %c0_i32_4 = arith.constant 0 : i32
    %10 = arith.cmpi ne, %9, %c0_i32_4 : i32
    scf.if %10 {
      %c0_i32_7 = arith.constant 0 : i32
      %14 = arith.minsi %5, %c0_i32_7 : i32
      %c0_i32_8 = arith.constant 0 : i32
      %15 = arith.maxsi %14, %c0_i32_8 : i32
      %c8_i32 = arith.constant 8 : i32
      %16 = arith.muli %arg1, %c8_i32 : i32
      %17 = tpu.iota {dimensions = array<i32: 0>} : vector<8x8xi32>
      %18 = vector.broadcast %16 : i32 to vector<8x8xi32>
      %19 = arith.addi %18, %17 : vector<8x8xi32>
      %c8_i32_9 = arith.constant 8 : i32
      %20 = arith.muli %15, %c8_i32_9 : i32
      %21 = tpu.iota {dimensions = array<i32: 1>} : vector<8x8xi32>
      %22 = vector.broadcast %20 : i32 to vector<8x8xi32>
      %23 = arith.addi %22, %21 : vector<8x8xi32>
      %24 = arith.subi %19, %23 : vector<8x8xi32>
      %25 = math.absi %24 : vector<8x8xi32>
      %c2_i32 = arith.constant 2 : i32
      %26 = vector.broadcast %c2_i32 : i32 to vector<8x8xi32>
      %27 = arith.cmpi sle, %25, %26 : vector<8x8xi32>
      %28 = arith.extui %27 : vector<8x8xi1> to vector<8x8xi32>
      %29 = arith.sitofp %28 : vector<8x8xi32> to vector<8x8xf32>
      %c0 = arith.constant 0 : index
      %c0_10 = arith.constant 0 : index
      %c0_11 = arith.constant 0 : index
      %30 = vector.load %arg3[%c0, %c0_10, %c0_11] : memref<1x8x32xf32, #tpu.memory_space<vmem>>, vector<1x8x32xf32>
      %31 = vector.shape_cast %30 : vector<1x8x32xf32> to vector<8x32xf32>
      %c0_12 = arith.constant 0 : index
      %c0_13 = arith.constant 0 : index
      %c0_14 = arith.constant 0 : index
      %32 = vector.load %arg4[%c0_12, %c0_13, %c0_14] : memref<1x8x32xf32, #tpu.memory_space<vmem>>, vector<1x8x32xf32>
      %33 = vector.shape_cast %32 : vector<1x8x32xf32> to vector<8x32xf32>
      %c0_15 = arith.constant 0 : index
      %c0_16 = arith.constant 0 : index
      %c0_17 = arith.constant 0 : index
      %34 = vector.load %arg5[%c0_15, %c0_16, %c0_17] : memref<1x8x32xf32, #tpu.memory_space<vmem>>, vector<1x8x32xf32>
      %35 = vector.shape_cast %34 : vector<1x8x32xf32> to vector<8x32xf32>
      %c0_18 = arith.constant 0 : index
      %c0_19 = arith.constant 0 : index
      %36 = vector.load %arg7[%c0_18, %c0_19] : memref<8x4xf32, #tpu.memory_space<vmem>>, vector<8x4xf32>
      %c0_20 = arith.constant 0 : index
      %c0_21 = arith.constant 0 : index
      %37 = vector.load %arg8[%c0_20, %c0_21] : memref<8x4xf32, #tpu.memory_space<vmem>>, vector<8x4xf32>
      %c0_22 = arith.constant 0 : index
      %c0_23 = arith.constant 0 : index
      %38 = vector.load %arg9[%c0_22, %c0_23] : memref<8x32xf32, #tpu.memory_space<vmem>>, vector<8x32xf32>
      %39 = vector.extract_strided_slice %31 {offsets = [0, 0], sizes = [8, 8], strides = [1, 1]} : vector<8x32xf32> to vector<8x8xf32>
      %40 = vector.extract_strided_slice %33 {offsets = [0, 0], sizes = [8, 8], strides = [1, 1]} : vector<8x32xf32> to vector<8x8xf32>
      %cst = arith.constant dense<0.000000e+00> : vector<8x8xf32>
      %41 = tpu.matmul %39, %40, %cst {dimension_numbers = #tpu.dot_dimension_numbers<[1], [1], [0], [0], [0, 0, 1, 0], [], []>} : vector<8x8xf32>, vector<8x8xf32>, vector<8x8xf32> -> vector<8x8xf32>
      %42 = vector.extract_strided_slice %36 {offsets = [0, 0], sizes = [8, 1], strides = [1, 1]} : vector<8x4xf32> to vector<8x1xf32>
      %cst_24 = arith.constant dense<0xFF800000> : vector<8xf32>
      %43 = vector.multi_reduction <maximumf>, %41, %cst_24 [1] : vector<8x8xf32> to vector<8xf32>
      %44 = vector.shape_cast %43 : vector<8xf32> to vector<8x1xf32>
      %45 = arith.maximumf %42, %44 : vector<8x1xf32>
      %46 = arith.subf %42, %45 : vector<8x1xf32>
      %47 = math.exp %46 : vector<8x1xf32>
      %48 = vector.broadcast %45 : vector<8x1xf32> to vector<8x8xf32>
      %49 = arith.subf %41, %48 : vector<8x8xf32>
      %50 = math.exp %49 : vector<8x8xf32>
      %51 = arith.mulf %50, %29 : vector<8x8xf32>
      %52 = vector.extract_strided_slice %37 {offsets = [0, 0], sizes = [8, 1], strides = [1, 1]} : vector<8x4xf32> to vector<8x1xf32>
      %53 = arith.mulf %47, %52 : vector<8x1xf32>
      %cst_25 = arith.constant dense<0.000000e+00> : vector<8xf32>
      %54 = vector.multi_reduction <add>, %51, %cst_25 [1] : vector<8x8xf32> to vector<8xf32>
      %55 = vector.shape_cast %54 : vector<8xf32> to vector<8x1xf32>
      %56 = arith.addf %53, %55 : vector<8x1xf32>
      %57 = vector.extract_strided_slice %38 {offsets = [0, 0], sizes = [8, 8], strides = [1, 1]} : vector<8x32xf32> to vector<8x8xf32>
      %58 = vector.broadcast %47 : vector<8x1xf32> to vector<8x8xf32>
      %59 = arith.mulf %58, %57 : vector<8x8xf32>
      %60 = vector.extract_strided_slice %35 {offsets = [0, 0], sizes = [8, 8], strides = [1, 1]} : vector<8x32xf32> to vector<8x8xf32>
      %cst_26 = arith.constant dense<0.000000e+00> : vector<8x8xf32>
      %61 = tpu.matmul %51, %60, %cst_26 {dimension_numbers = #tpu.dot_dimension_numbers<[1], [0], [0], [1], [0, 0, 1, 1], [], []>} : vector<8x8xf32>, vector<8x8xf32>, vector<8x8xf32> -> vector<8x8xf32>
      %62 = arith.addf %59, %61 : vector<8x8xf32>
      %63 = vector.extract_strided_slice %31 {offsets = [0, 8], sizes = [8, 8], strides = [1, 1]} : vector<8x32xf32> to vector<8x8xf32>
      %64 = vector.extract_strided_slice %33 {offsets = [0, 8], sizes = [8, 8], strides = [1, 1]} : vector<8x32xf32> to vector<8x8xf32>
      %cst_27 = arith.constant dense<0.000000e+00> : vector<8x8xf32>
      %65 = tpu.matmul %63, %64, %cst_27 {dimension_numbers = #tpu.dot_dimension_numbers<[1], [1], [0], [0], [0, 0, 1, 0], [], []>} : vector<8x8xf32>, vector<8x8xf32>, vector<8x8xf32> -> vector<8x8xf32>
      %66 = vector.extract_strided_slice %36 {offsets = [0, 1], sizes = [8, 1], strides = [1, 1]} : vector<8x4xf32> to vector<8x1xf32>
      %cst_28 = arith.constant dense<0xFF800000> : vector<8xf32>
      %67 = vector.multi_reduction <maximumf>, %65, %cst_28 [1] : vector<8x8xf32> to vector<8xf32>
      %68 = vector.shape_cast %67 : vector<8xf32> to vector<8x1xf32>
      %69 = arith.maximumf %66, %68 : vector<8x1xf32>
      %70 = arith.subf %66, %69 : vector<8x1xf32>
      %71 = math.exp %70 : vector<8x1xf32>
      %72 = vector.broadcast %69 : vector<8x1xf32> to vector<8x8xf32>
      %73 = arith.subf %65, %72 : vector<8x8xf32>
      %74 = math.exp %73 : vector<8x8xf32>
      %75 = arith.mulf %74, %29 : vector<8x8xf32>
      %76 = vector.extract_strided_slice %37 {offsets = [0, 1], sizes = [8, 1], strides = [1, 1]} : vector<8x4xf32> to vector<8x1xf32>
      %77 = arith.mulf %71, %76 : vector<8x1xf32>
      %cst_29 = arith.constant dense<0.000000e+00> : vector<8xf32>
      %78 = vector.multi_reduction <add>, %75, %cst_29 [1] : vector<8x8xf32> to vector<8xf32>
      %79 = vector.shape_cast %78 : vector<8xf32> to vector<8x1xf32>
      %80 = arith.addf %77, %79 : vector<8x1xf32>
      %81 = vector.extract_strided_slice %38 {offsets = [0, 8], sizes = [8, 8], strides = [1, 1]} : vector<8x32xf32> to vector<8x8xf32>
      %82 = vector.broadcast %71 : vector<8x1xf32> to vector<8x8xf32>
      %83 = arith.mulf %82, %81 : vector<8x8xf32>
      %84 = vector.extract_strided_slice %35 {offsets = [0, 8], sizes = [8, 8], strides = [1, 1]} : vector<8x32xf32> to vector<8x8xf32>
      %cst_30 = arith.constant dense<0.000000e+00> : vector<8x8xf32>
      %85 = tpu.matmul %75, %84, %cst_30 {dimension_numbers = #tpu.dot_dimension_numbers<[1], [0], [0], [1], [0, 0, 1, 1], [], []>} : vector<8x8xf32>, vector<8x8xf32>, vector<8x8xf32> -> vector<8x8xf32>
      %86 = arith.addf %83, %85 : vector<8x8xf32>
      %87 = vector.extract_strided_slice %31 {offsets = [0, 16], sizes = [8, 8], strides = [1, 1]} : vector<8x32xf32> to vector<8x8xf32>
      %88 = vector.extract_strided_slice %33 {offsets = [0, 16], sizes = [8, 8], strides = [1, 1]} : vector<8x32xf32> to vector<8x8xf32>
      %cst_31 = arith.constant dense<0.000000e+00> : vector<8x8xf32>
      %89 = tpu.matmul %87, %88, %cst_31 {dimension_numbers = #tpu.dot_dimension_numbers<[1], [1], [0], [0], [0, 0, 1, 0], [], []>} : vector<8x8xf32>, vector<8x8xf32>, vector<8x8xf32> -> vector<8x8xf32>
      %90 = vector.extract_strided_slice %36 {offsets = [0, 2], sizes = [8, 1], strides = [1, 1]} : vector<8x4xf32> to vector<8x1xf32>
      %cst_32 = arith.constant dense<0xFF800000> : vector<8xf32>
      %91 = vector.multi_reduction <maximumf>, %89, %cst_32 [1] : vector<8x8xf32> to vector<8xf32>
      %92 = vector.shape_cast %91 : vector<8xf32> to vector<8x1xf32>
      %93 = arith.maximumf %90, %92 : vector<8x1xf32>
      %94 = arith.subf %90, %93 : vector<8x1xf32>
      %95 = math.exp %94 : vector<8x1xf32>
      %96 = vector.broadcast %93 : vector<8x1xf32> to vector<8x8xf32>
      %97 = arith.subf %89, %96 : vector<8x8xf32>
      %98 = math.exp %97 : vector<8x8xf32>
      %99 = arith.mulf %98, %29 : vector<8x8xf32>
      %100 = vector.extract_strided_slice %37 {offsets = [0, 2], sizes = [8, 1], strides = [1, 1]} : vector<8x4xf32> to vector<8x1xf32>
      %101 = arith.mulf %95, %100 : vector<8x1xf32>
      %cst_33 = arith.constant dense<0.000000e+00> : vector<8xf32>
      %102 = vector.multi_reduction <add>, %99, %cst_33 [1] : vector<8x8xf32> to vector<8xf32>
      %103 = vector.shape_cast %102 : vector<8xf32> to vector<8x1xf32>
      %104 = arith.addf %101, %103 : vector<8x1xf32>
      %105 = vector.extract_strided_slice %38 {offsets = [0, 16], sizes = [8, 8], strides = [1, 1]} : vector<8x32xf32> to vector<8x8xf32>
      %106 = vector.broadcast %95 : vector<8x1xf32> to vector<8x8xf32>
      %107 = arith.mulf %106, %105 : vector<8x8xf32>
      %108 = vector.extract_strided_slice %35 {offsets = [0, 16], sizes = [8, 8], strides = [1, 1]} : vector<8x32xf32> to vector<8x8xf32>
      %cst_34 = arith.constant dense<0.000000e+00> : vector<8x8xf32>
      %109 = tpu.matmul %99, %108, %cst_34 {dimension_numbers = #tpu.dot_dimension_numbers<[1], [0], [0], [1], [0, 0, 1, 1], [], []>} : vector<8x8xf32>, vector<8x8xf32>, vector<8x8xf32> -> vector<8x8xf32>
      %110 = arith.addf %107, %109 : vector<8x8xf32>
      %111 = vector.extract_strided_slice %31 {offsets = [0, 24], sizes = [8, 8], strides = [1, 1]} : vector<8x32xf32> to vector<8x8xf32>
      %112 = vector.extract_strided_slice %33 {offsets = [0, 24], sizes = [8, 8], strides = [1, 1]} : vector<8x32xf32> to vector<8x8xf32>
      %cst_35 = arith.constant dense<0.000000e+00> : vector<8x8xf32>
      %113 = tpu.matmul %111, %112, %cst_35 {dimension_numbers = #tpu.dot_dimension_numbers<[1], [1], [0], [0], [0, 0, 1, 0], [], []>} : vector<8x8xf32>, vector<8x8xf32>, vector<8x8xf32> -> vector<8x8xf32>
      %114 = vector.extract_strided_slice %36 {offsets = [0, 3], sizes = [8, 1], strides = [1, 1]} : vector<8x4xf32> to vector<8x1xf32>
      %cst_36 = arith.constant dense<0xFF800000> : vector<8xf32>
      %115 = vector.multi_reduction <maximumf>, %113, %cst_36 [1] : vector<8x8xf32> to vector<8xf32>
      %116 = vector.shape_cast %115 : vector<8xf32> to vector<8x1xf32>
      %117 = arith.maximumf %114, %116 : vector<8x1xf32>
      %118 = arith.subf %114, %117 : vector<8x1xf32>
      %119 = math.exp %118 : vector<8x1xf32>
      %120 = vector.broadcast %117 : vector<8x1xf32> to vector<8x8xf32>
      %121 = arith.subf %113, %120 : vector<8x8xf32>
      %122 = math.exp %121 : vector<8x8xf32>
      %123 = arith.mulf %122, %29 : vector<8x8xf32>
      %124 = vector.extract_strided_slice %37 {offsets = [0, 3], sizes = [8, 1], strides = [1, 1]} : vector<8x4xf32> to vector<8x1xf32>
      %125 = arith.mulf %119, %124 : vector<8x1xf32>
      %cst_37 = arith.constant dense<0.000000e+00> : vector<8xf32>
      %126 = vector.multi_reduction <add>, %123, %cst_37 [1] : vector<8x8xf32> to vector<8xf32>
      %127 = vector.shape_cast %126 : vector<8xf32> to vector<8x1xf32>
      %128 = arith.addf %125, %127 : vector<8x1xf32>
      %129 = vector.extract_strided_slice %38 {offsets = [0, 24], sizes = [8, 8], strides = [1, 1]} : vector<8x32xf32> to vector<8x8xf32>
      %130 = vector.broadcast %119 : vector<8x1xf32> to vector<8x8xf32>
      %131 = arith.mulf %130, %129 : vector<8x8xf32>
      %132 = vector.extract_strided_slice %35 {offsets = [0, 24], sizes = [8, 8], strides = [1, 1]} : vector<8x32xf32> to vector<8x8xf32>
      %cst_38 = arith.constant dense<0.000000e+00> : vector<8x8xf32>
      %133 = tpu.matmul %123, %132, %cst_38 {dimension_numbers = #tpu.dot_dimension_numbers<[1], [0], [0], [1], [0, 0, 1, 1], [], []>} : vector<8x8xf32>, vector<8x8xf32>, vector<8x8xf32> -> vector<8x8xf32>
      %134 = arith.addf %131, %133 : vector<8x8xf32>
      %135 = tpu.concatenate %45, %69, %93, %117 in 1 : vector<8x1xf32>, vector<8x1xf32>, vector<8x1xf32>, vector<8x1xf32> -> vector<8x4xf32>
      %c0_39 = arith.constant 0 : index
      %c0_40 = arith.constant 0 : index
      %136 = vector.load %arg7[%c0_39, %c0_40] : memref<8x4xf32, #tpu.memory_space<vmem>>, vector<8x4xf32>
      tpu.vector_store %arg7[%c0_39, %c0_40], %135 {strides = array<i32>} : memref<8x4xf32, #tpu.memory_space<vmem>>, vector<8x4xf32>,
      %137 = tpu.concatenate %56, %80, %104, %128 in 1 : vector<8x1xf32>, vector<8x1xf32>, vector<8x1xf32>, vector<8x1xf32> -> vector<8x4xf32>
      %c0_41 = arith.constant 0 : index
      %c0_42 = arith.constant 0 : index
      %138 = vector.load %arg8[%c0_41, %c0_42] : memref<8x4xf32, #tpu.memory_space<vmem>>, vector<8x4xf32>
      tpu.vector_store %arg8[%c0_41, %c0_42], %137 {strides = array<i32>} : memref<8x4xf32, #tpu.memory_space<vmem>>, vector<8x4xf32>,
      %139 = tpu.concatenate %62, %86, %110, %134 in 1 : vector<8x8xf32>, vector<8x8xf32>, vector<8x8xf32>, vector<8x8xf32> -> vector<8x32xf32>
      %c0_43 = arith.constant 0 : index
      %c0_44 = arith.constant 0 : index
      %140 = vector.load %arg9[%c0_43, %c0_44] : memref<8x32xf32, #tpu.memory_space<vmem>>, vector<8x32xf32>
      tpu.vector_store %arg9[%c0_43, %c0_44], %139 {strides = array<i32>} : memref<8x32xf32, #tpu.memory_space<vmem>>, vector<8x32xf32>,
    } else {
    }
    %c0_i32_5 = arith.constant 0 : i32
    %11 = arith.cmpi eq, %arg2, %c0_i32_5 : i32
    %12 = arith.extui %11 : i1 to i32
    %c0_i32_6 = arith.constant 0 : i32
    %13 = arith.cmpi ne, %12, %c0_i32_6 : i32
    scf.if %13 {
      %c0 = arith.constant 0 : index
      %c0_7 = arith.constant 0 : index
      %14 = vector.load %arg9[%c0, %c0_7] : memref<8x32xf32, #tpu.memory_space<vmem>>, vector<8x32xf32>
      %c0_8 = arith.constant 0 : index
      %c0_9 = arith.constant 0 : index
      %15 = vector.load %arg8[%c0_8, %c0_9] : memref<8x4xf32, #tpu.memory_space<vmem>>, vector<8x4xf32>
      %cst = arith.constant 1.000000e+00 : f32
      %16 = vector.broadcast %cst : f32 to vector<8x4xf32>
      %17 = arith.divf %16, %15 : vector<8x4xf32>
      %18 = vector.extract_strided_slice %14 {offsets = [0, 0], sizes = [8, 8], strides = [1, 1]} : vector<8x32xf32> to vector<8x8xf32>
      %19 = vector.extract_strided_slice %17 {offsets = [0, 0], sizes = [8, 1], strides = [1, 1]} : vector<8x4xf32> to vector<8x1xf32>
      %20 = vector.broadcast %19 : vector<8x1xf32> to vector<8x8xf32>
      %21 = arith.mulf %18, %20 : vector<8x8xf32>
      %22 = vector.extract_strided_slice %14 {offsets = [0, 8], sizes = [8, 8], strides = [1, 1]} : vector<8x32xf32> to vector<8x8xf32>
      %23 = vector.extract_strided_slice %17 {offsets = [0, 1], sizes = [8, 1], strides = [1, 1]} : vector<8x4xf32> to vector<8x1xf32>
      %24 = vector.broadcast %23 : vector<8x1xf32> to vector<8x8xf32>
      %25 = arith.mulf %22, %24 : vector<8x8xf32>
      %26 = vector.extract_strided_slice %14 {offsets = [0, 16], sizes = [8, 8], strides = [1, 1]} : vector<8x32xf32> to vector<8x8xf32>
      %27 = vector.extract_strided_slice %17 {offsets = [0, 2], sizes = [8, 1], strides = [1, 1]} : vector<8x4xf32> to vector<8x1xf32>
      %28 = vector.broadcast %27 : vector<8x1xf32> to vector<8x8xf32>
      %29 = arith.mulf %26, %28 : vector<8x8xf32>
      %30 = vector.extract_strided_slice %14 {offsets = [0, 24], sizes = [8, 8], strides = [1, 1]} : vector<8x32xf32> to vector<8x8xf32>
      %31 = vector.extract_strided_slice %17 {offsets = [0, 3], sizes = [8, 1], strides = [1, 1]} : vector<8x4xf32> to vector<8x1xf32>
      %32 = vector.broadcast %31 : vector<8x1xf32> to vector<8x8xf32>
      %33 = arith.mulf %30, %32 : vector<8x8xf32>
      %34 = tpu.concatenate %21, %25, %29, %33 in 1 : vector<8x8xf32>, vector<8x8xf32>, vector<8x8xf32>, vector<8x8xf32> -> vector<8x32xf32>
      %c0_10 = arith.constant 0 : index
      %c0_11 = arith.constant 0 : index
      %c0_12 = arith.constant 0 : index
      %35 = vector.load %arg6[%c0_10, %c0_11, %c0_12] : memref<1x8x32xf32, #tpu.memory_space<vmem>>, vector<1x8x32xf32>
      %36 = vector.shape_cast %35 : vector<1x8x32xf32> to vector<8x32xf32>
      %37 = vector.shape_cast %34 : vector<8x32xf32> to vector<1x8x32xf32>
      tpu.vector_store %arg6[%c0_10, %c0_11, %c0_12], %37 {strides = array<i32>} : memref<1x8x32xf32, #tpu.memory_space<vmem>>, vector<1x8x32xf32>,
    } else {
    }
    return
  }
  func.func @transform_0(%arg0: i32, %arg1: i32, %arg2: i32) -> (i32, i32, i32) {
    %c0_i32 = arith.constant 0 : i32
    %c0_i32_0 = arith.constant 0 : i32
    return %arg0, %arg1, %c0_i32 : i32, i32, i32
  }
  func.func @transform_1(%arg0: i32, %arg1: i32, %arg2: i32) -> (i32, i32, i32) {
    %c1_i32 = arith.constant 1 : i32
    %0 = arith.muli %arg1, %c1_i32 : i32
    %1 = arith.addi %0, %arg2 : i32
    %c0_i32 = arith.constant 0 : i32
    %2 = arith.subi %1, %c0_i32 : i32
    %c0_i32_0 = arith.constant 0 : i32
    %3 = arith.minsi %2, %c0_i32_0 : i32
    %c0_i32_1 = arith.constant 0 : i32
    %4 = arith.maxsi %3, %c0_i32_1 : i32
    %c0_i32_2 = arith.constant 0 : i32
    %c0_i32_3 = arith.constant 0 : i32
    return %arg0, %4, %c0_i32_2 : i32, i32, i32
  }
  func.func @transform_2(%arg0: i32, %arg1: i32, %arg2: i32) -> (i32, i32, i32) {
    %c1_i32 = arith.constant 1 : i32
    %0 = arith.muli %arg1, %c1_i32 : i32
    %1 = arith.addi %0, %arg2 : i32
    %c0_i32 = arith.constant 0 : i32
    %2 = arith.subi %1, %c0_i32 : i32
    %c0_i32_0 = arith.constant 0 : i32
    %3 = arith.minsi %2, %c0_i32_0 : i32
    %c0_i32_1 = arith.constant 0 : i32
    %4 = arith.maxsi %3, %c0_i32_1 : i32
    %c0_i32_2 = arith.constant 0 : i32
    %c0_i32_3 = arith.constant 0 : i32
    return %arg0, %4, %c0_i32_2 : i32, i32, i32
  }
  func.func @transform_3(%arg0: i32, %arg1: i32, %arg2: i32) -> (i32, i32, i32) {
    %c0_i32 = arith.constant 0 : i32
    %c0_i32_0 = arith.constant 0 : i32
    return %arg0, %arg1, %c0_i32 : i32, i32, i32
  }
}

</mosaic_0001>

<bundles_post_ra>
// kernel: tpu_custom_call.1
= control target key start
LH: loop header
LB: loop body
LE: loop exit
PB: predicated region body
PF: predicated region fallthrough
CT: control target
= control target key end

     0   :  { %s1559_s0 = inlined_call_operand.hbm [shape: f32[2,8,32], index: 0, kind: input, shape index: {}]   ;;  %s1560_s1 = inlined_call_operand.hbm [shape: f32[2,8,32], index: 1, kind: input, shape index: {}]   ;;  %s1561_s2 = inlined_call_operand.hbm [shape: f32[2,8,32], index: 2, kind: input, shape index: {}]   ;;  %s1562_s3 = inlined_call_operand.hbm [shape: f32[2,8,32], index: 3, kind: output, shape index: {}]  }
   0x1   :  { %1565 = sst [smem:[#allocation18_spill]] %s1560_s1 }
   0x2   :  { %8 = vsyncpa [#allocation6], 0 }
   0x3   :  { %10 = vsyncpa [#allocation6 + $0x1], 0 }
   0x4   :  { %11 = vsyncpa [#allocation9], 0 }
   0x5   :  { %13 = vsyncpa [#allocation9 + $0x1], 0 }
   0x6   :  { %14 = vsyncpa [#allocation7], 0 }
   0x7   :  { %16 = vsyncpa [#allocation7 + $0x1], 0  ;;  %s1282_s12 = smov 0   ;;  %s1284_s13 = smov 0  }
   0x8   :  { %s1286_s14 = smov 0   ;;  %s1288_s15 = smov 0  }
   0x9   :  { %s1290_s16 = smov 0   ;;  %s1292_s17 = smov 0  }
   0xa LB: > { %1566 = sst [smem:[#allocation15_spill]] %s1244_s16  ;;  %s1313_s18 = sadd.s32 4294967295, %s1248_s17   ;;  %s1248_s17 = sphi %s1292_s17, %s22_s17   ;;  %s1244_s16 = sphi %s1290_s16, %s1578_s16   ;;  %s1240_s15 = sphi %s1288_s15, %s1577_s15   ;;  %s1236_s14 = sphi %s1286_s14, %s1581_s14   ;;  %s1232_s13 = sphi %s1284_s13, %s1580_s13   ;;  %s1228_s12 = sphi %s1282_s12, %s1579_s12  }
   0xb   : > { %s927_s19 = sadd.s32 4294967294, %s1248_s17   ;;  %s41_s20 = sadd.s32 1, %s1244_s16 }
   0xc   : > { %s50_s21 = sadd.s32 1, %s1236_s14  ;;  %p43_p0 = scmp.ge.s32.totalorder %s41_s20, 2 }
   0xd   : > { %p57_p1 = scmp.ne.s32.totalorder %s1236_s14, %s1232_s13  ;;  %p58_p2 = scmp.eq.s32.totalorder %s1248_s17, 0 }
   0xe   : > { %p63_p3 = scmp.ne.s32.totalorder %s1232_s13, %s1228_s12  ;;  %s1583_s20 = smov (%p43_p0, %s41_s20), 0 }
   0xf   : > { %1567 = sst [smem:[#allocation16_spill]] %s1583_s20  ;;  %p1325_p4 = por %p58_p2, %p57_p1 }
  0x10   : > { %p64_p5 = scmp.eq.s32.totalorder %s1313_s18, 0  ;;  %s45_s23 = ssub.s32 %s1244_s16, %s1583_s20 }
  0x11   : > { %p165_p6 = scmp.eq.s32.totalorder %s1313_s18, 1  ;;  %p48_p7 = scmp.eq.s32.totalorder %s45_s23, 0 }
  0x12   : > { %p1333_p8 = por %p64_p5, %p63_p3  ;;  %p171_p10 = scmp.eq.s32.totalorder %s927_s19, 1 }
  0x13   : > { %p1337_p9 = por %p165_p6, %p57_p1  ;;  %p929_p12 = scmp.ge.s32.totalorder %s1248_s17, 2 }
  0x14   : > { %s1342_s26 = scalar_select %p48_p7, %s1236_s14, %s50_s21  }
  0x15   : > { %p1344_p11 = por %p171_p10, %p63_p3  ;;  %p980_p13 = scmp.lt.s32.totalorder %s1248_s17, 2 }
  0x16   : > { %1571 = sst [smem:[#allocation17_spill]] %s1342_s26  ;;  %s191_s28 = sand.u32 1, %s1236_s14  }
  0x17   : > { %s930_s29 = sshll.u32 %s191_s28, 3  ;;  %s931_s30 = sshll.u32 %s1244_s16, 3 }
  0x18   : > { %p1354_p0 = pnand %p980_p13, %p1325_p4  ;;  %s211_s5 = sand.u32 1, %s1248_s17  }
  0x19   : > { %s1574_s1 = sld [smem:[#allocation18_spill]]  ;;  %s215_s10 = scalar_lea.vmem [#allocation8], %s930_s29 }
  0x1a   : > { %s229_s11 = sshll.u32 %s215_s10, 4  ;;  %s212_s19 = scalar_lea.sflag [#allocation9], %s211_s5  ;;  %s230_s11 = int_to_ptr.vmem [resolvable:$true] %s229_s11 }
  0x1b   : > { %p936_p1 = scmp.ge.s32.totalorder %s1248_s17, 1  ;;  %p259_p2 = scmp.lt.s32.totalorder %s1248_s17, 3 }
  0x1c   : > { %s200_s6 = scalar_lea.hbm %s1559_s0, %s931_s30  ;;  %s192_s10 = scalar_lea.sflag [#allocation6], %s191_s28 }
  0x1d   : > { %p1366_p3 = pnand %p936_p1, %p259_p2  ;;  %s202_s7 = sshll.u32 %s200_s6, 4  ;;  %s203_s7 = int_to_ptr.hbm [resolvable:$true] %s202_s7 }
  0x1e   : > { %s240_s16 = scalar_lea.vmem [#allocation10], %s930_s29  ;;  %s1383_s22 = sand.u32 (!%p1366_p3), 1, %s1232_s13  }
  0x1f   : > { %s225_s8 = scalar_lea.hbm %s1574_s1, %s931_s30  ;;  %s254_s26 = sshll.u32 %s240_s16, 4  ;;  %s255_s26 = int_to_ptr.vmem [resolvable:$true] %s254_s26 }
  0x20   : > { %s227_s9 = sshll.u32 %s225_s8, 4  ;;  %s195_s8 = scalar_lea.vmem [#allocation5], %s930_s29  ;;  %s228_s9 = int_to_ptr.hbm [resolvable:$true] %s227_s9 }
  0x21   : > { %972 = dma.hbm_to_vmem [thread:$0]  (!%p1354_p0), %s228_s9, 128, %s230_s11, %s212_s19  }
  0x22   : > { %s204_s1 = sshll.u32 %s195_s8, 4  ;;  %s250_s11 = scalar_lea.hbm %s1561_s2, %s931_s30  ;;  %s205_s1 = int_to_ptr.vmem [resolvable:$true] %s204_s1 }
  0x23   : > { %969 = dma.hbm_to_vmem [thread:$0]  (!%p1354_p0), %s203_s7, 128, %s205_s1, %s192_s10  }
  0x24   : > { %s252_s20 = sshll.u32 %s250_s11, 4  ;;  %263 = sbr.rel (%p1366_p3) target bundleno = 1151 (0x47f), region = 32  ;;  %s253_s20 = int_to_ptr.hbm [resolvable:$true] %s252_s20 }
  0x25   : > { %975 = dma.hbm_to_vmem [thread:$0]  (!%p1354_p0), %s253_s20, 128, %s255_s26, %s212_s19  }
  0x26   : > { %s1386_s1 = sshll.u32 (!%p1366_p3), %s1383_s22, 3  ;;  %s266_s28 = scalar_lea.sflag (!%p1366_p3), [#allocation6], %s1383_s22 }
  0x27   : > { %s269_s30 = scalar_lea.vmem (!%p1366_p3), [#allocation5], %s1386_s1 }
  0x29   : > { %1215 = dma.done.wait (%p1333_p8), %s266_s28, 128  }
  0x2a   : > { %1217 = vsyncadd (%p1333_p8), %s266_s28, 4294967168  ;;  %s275_s16 = sand.u32 1, %s1313_s18   ;;  %s279_s26 = scalar_lea.vmem [#allocation8], %s1386_s1 }
  0x2b   : > { %s276_s20 = scalar_lea.sflag [#allocation9], %s275_s16 }
  0x2c   : > { %1219 = dma.done.wait (%p1333_p8), %s276_s20, 256  }
  0x2d   : > { %1221 = vsyncadd (%p1333_p8), %s276_s20, 4294967040  ;;  %vm376_vm0 = vcmask 64512   ;;  %v371_v0 = vld [vmem:[%s279_s26] sm:$0xff]  ;;  %s1250_s29 = smov 120   ;;  %v370_v1 = vld [vmem:[%s269_s30] sm:$0xff]  ;;  %s1251_s4 = smov 112   ;;  %v354_v18 = vlaneseq }
  0x2e   : > { %456 = vrot.lane.b32.xlu1 %v371_v0, %s1250_s29  ;;  %942 = vmatpush.xpose.msk.msra.mxu0 %vm376_vm0, %v371_v0  ;;  %s1252_s18 = smov 104   ;;  %vm337_vm1 = vcmask 31744   ;;  %v1253_v2 = vmov -1e+30   ;;  %v1254_v7 = vmov 0   ;;  %v1255_v8 = vmov 0.0  }
  0x2f   : > { %543 = vrot.lane.b32.xlu2 %v371_v0, %s1251_s4  ;;  %338 = vst.msk [vmem:[#allocation2] sm:$0xff] %vm337_vm1, %v1253_v2  ;;  %1042 = vset.pattern.permute.xlu0 %v1254_v7  ;;  %s289_s24 = scalar_lea.vmem [#allocation10], %s1386_s1  ;;  %v355_v19 = vshrl.u32 %v354_v18, 7  ;;  %v360_v20 = vand.u32 127, %v354_v18  ;;  %v1256_v33 = vmov 1   ;;  %v1257_v41 = vmov 3  }
  0x30   : > { %339 = vst.msk [vmem:[#allocation3] sm:$0xff] %vm337_vm1, %v1255_v8  ;;  %v1428_v17 = vld [vmem:[%s289_s24] sm:$0xff]  ;;  %1043 = vset.pattern.permute.xlu2 %v1256_v33  ;;  %v1258_v48 = vmov 2   ;;  %vm340_vm4 = vcmask 261120   ;;  %vm713_vm5 = vcmask 7168   ;;  %vm715_vm6 = vcmask 15360  }
  0x31   : > { %943 = vmatmul.msk.f32.vlgmr.msra.gmra.mxu0 %vm376_vm0, %v370_v1  ;;  %448 = vmatpush.msra.mxu1 %v1428_v17  ;;  %v363_v21 = vsub.s32 %v355_v19, %v360_v20  ;;  %341 = vst.msk [vmem:[#allocation4] sm:$0xff] %vm340_vm4, %v1255_v8  ;;  %vm717_vm7 = vcmask 23552   ;;  %s1259_s19 = smov 8   ;;  %s1260_s21 = smov 16   ;;  %vm726_vm12 = vcmask 130048   ;;  %vm728_vm13 = vcmask 195584  }
  0x32   : > { %1044 = vset.pattern.permute.xlu1 %v1258_v48  ;;  %s1261_s23 = smov 24   ;;  %s955_s6 = sshll.u32 %s1240_s15, 3 }
  0x33   : > { %v365_v22 = vsub.s32 0, %v363_v21  ;;  %vm364_vm2 = vcmp.lt.s32.totalorder %v363_v21, 0  ;;  %s793_s10 = scalar_lea.hbm %s1562_s3, %s955_s6  ;;  %s322_s5 = scalar_lea.vmem [#allocation11], %s1386_s1 }
  0x34   : > { %s795_s9 = sshll.u32 %s322_s5, 4  ;;  %s797_s11 = sshll.u32 %s793_s10, 4  ;;  %s796_s9 = int_to_ptr.vmem [resolvable:$true] %s795_s9  ;;  %s798_s11 = int_to_ptr.hbm [resolvable:$true] %s797_s11 }
  0x35   : > { %v366_v26 = vsel %vm364_vm2, %v365_v22, %v363_v21  ;;  %s782_s15 = scalar_lea.sflag [#allocation7], %s1383_s22  ;;  %s1176_s28 = sshra.s32 %s798_s11, 4  ;;  %s1177_s28 = int_to_ptr.hbm [resolvable:$true] %s1176_s28 }
  0x36   : > { %454 = vrot.lane.b32.xlu1 %v370_v1, %s1250_s29  ;;  %v1417_v12 = vld [vmem:[#allocation2] sm:$0xff]  ;;  %vm367_vm3 = vcmp.le.s32.totalorder %v366_v26, 2  ;;  %s1178_s30 = scalar_lea.hbm %s1177_s28, 8  ;;  %s1182_s20 = scalar_lea.hbm %s1562_s3, 16 }
  0x37   : > { %629 = vrot.lane.b32.xlu2 %v371_v0, %s1252_s18  ;;  %v1437_v29 = vsel %vm367_vm3, 1.0, %v1255_v8  ;;  %v374_v26 = vld [vmem:[#allocation3] sm:$0xff]  ;;  %p1179_p4 = scmp.ne.s32.totalorder %s1177_s28, %s1178_s30  ;;  %p1183_p7 = scmp.lt.s32.totalorder %s1177_s28, %s1562_s3 }
  0x38   : > { %p1184_p8 = scmp.lt.s32.totalorder %s1182_s20, %s1178_s30 }
  0x39   : > { %p1180_p5 = pnand %p1179_p4, %p1337_p9 }
  0x3a   : > { %p1185_p10 = por %p1184_p8, %p1183_p7 }
  0x3b   : > { %p1181_p6 = pneg %p1180_p5 }
  0x3d   : > { %p1186_p13 = pnand %p1185_p10, %p1181_p6 }
  0x3e   : > { %541 = vrot.lane.b32.xlu1 %v370_v1, %s1251_s4 }
  0x3f   : > { %627 = vrot.lane.b32.xlu2 %v370_v1, %s1252_s18 }
  0x89   : > { %v544_v9 = vpop.permute.xlu2 %543 }
  0x8a   : > { %948 = vmatpush.xpose.msk.msrb.mxu1 %vm376_vm0, %v544_v9 }
  0x91   : > { %v630_v10 = vpop.permute.xlu2 %629 }
  0x92   : > { %951 = vmatpush.xpose.msk.msrb.mxu0 %vm376_vm0, %v630_v10 }
  0x99   : > { %v628_v11 = vpop.permute.xlu2 %627 }
  0x9a   : > { %952 = vmatmul.msk.f32.vlgmr.msrb.gmra.mxu0 %vm376_vm0, %v628_v11 }
  0xa0   : > { %v457_v3 = vpop.permute.xlu1 %456 }
  0xa1   : > { %945 = vmatpush.xpose.msk.msra.mxu2 %vm376_vm0, %v457_v3 }
  0xa8   : > { %v455_v4 = vpop.permute.xlu1 %454 }
  0xa9   : > { %946 = vmatmul.msk.f32.vlgmr.msra.gmra.mxu2 %vm376_vm0, %v455_v4 }
  0xae   : > { %v400_v5 = vpop.f32.mrf.mxu0 }
  0xaf   : > { %v403_v6 = vsel %vm376_vm0, %v400_v5, -inf }
  0xb0   : > { %404 = vmax.xlane.f32.xlu0 %v403_v6  ;;  %v542_v32 = vpop.permute.xlu1 %541 }
 0x117   : > { %v1432_v27 = vpop.f32.mrf.mxu0 }
 0x118   : > { %v655_v28 = vsel %vm376_vm0, %v1432_v27, -inf }
 0x123   : > { %v405_v13 = vpop.xlane.xlu0 %404 }
 0x124   : > { %v1420_v14 = vmax.f32 %v1417_v12, %v405_v13 }
 0x126   : > { %412 = vperm.xlu0 %1042, %v1420_v14   ;;  %v407_v42 = vsub.f32 %v1417_v12, %v1420_v14 }
 0x128   : > { %v408_v43 = vmul.f32 1.442695, %v407_v42 }
 0x12c   : > { %v1423_v15 = vpop.f32.mrf.mxu2 }
 0x12d   : > { %v482_v16 = vsel %vm376_vm0, %v1423_v15, -inf }
 0x12e   : > { %483 = vmax.xlane.f32.xlu1 %v482_v16  ;;  %1050 = vset.pattern.permute.xlu0 %v1256_v33 }
 0x150   : > { %656 = vmax.xlane.f32.xlu0 %v655_v28 }
 0x164   : > { %510 = vrot.lane.b32.xlu0 %v1428_v17, %s1250_s29 }
 0x198   : > { %v413_v23 = vpop.permute.xlu0 %412 }
 0x199   : > { %v415_v24 = vsub.f32 %v400_v5, %v413_v23 }
 0x19b   : > { %v416_v25 = vmul.f32 1.442695, %v415_v24 }
 0x19d   : > { %1054 = vpow2.f32 %v416_v25 }
 0x19e   : > { %1056 = vpow2.f32 %v408_v43 }
 0x1a1   : > { %v484_v37 = vpop.xlane.xlu1 %483 }
 0x1a2   : > { %v485_v38 = vmax.f32 %v1417_v12, %v484_v37 }
 0x1a3   : > { %v1055_v30 = vpop.eup %1054 }
 0x1a4   : > { %v1440_v31 = vmul.f32 %v1055_v30, %v1437_v29  ;;  %v486_v44 = vsub.f32 %v1417_v12, %v485_v38  ;;  %v1465_v46 = vpop.eup %1056  ;;  %v714_v52 = vsel %vm713_vm5, %v1420_v14, %v485_v38 }
 0x1a6   : > { %944 = vmatmul.msk.f32.vlgmr.msra.gmra.mxu1 %vm376_vm0, %v1440_v31  ;;  %v487_v45 = vmul.f32 1.442695, %v486_v44  ;;  %v420_v3 = vsel %vm376_vm0, %v1440_v31, 0.0 }
 0x1a8   : > { %1058 = vpow2.f32 %v487_v45 }
 0x1ae   : > { %949 = vmatmul.msk.f32.vlgmr.msrb.gmra.mxu1 %vm376_vm0, %v542_v32  ;;  %v1468_v47 = vpop.eup %1058 }
 0x1c3   : > { %v657_v39 = vpop.xlane.xlu0 %656 }
 0x1c4   : > { %v1455_v40 = vmax.f32 %v1417_v12, %v657_v39 }
 0x1d6   : > { %v511_v49 = vpop.permute.xlu0 %510 }
 0x1d7   : > { %531 = vmatpush.msra.mxu3 %v511_v49 }
 0x223   : > { %v1447_v34 = vpop.f32.mrf.mxu1 }
 0x22b   : > { %v1449_v35 = vpop.f32.mrf.mxu1 }
 0x22c   : > { %v569_v36 = vsel %vm376_vm0, %v1449_v35, -inf }
 0x22d   : > { %570 = vmax.xlane.f32.xlu2 %v569_v36 }
 0x245   : > { %491 = vperm.xlu2 %1043, %v485_v38  }
 0x24d   : > { %1045 = vset.pattern.permute.xlu2 %v1257_v41 }
 0x24e   : > { %664 = vperm.xlu2 %1045, %v1455_v40  }
 0x256   : > { %682 = vrot.lane.b32.xlu2 %v1428_v17, %s1252_s18 }
 0x257   : > { %1046 = vset.pattern.permute.xlu2 %v1254_v7 }
 0x25e   : > { %426 = vperm.xlu2 %1046, %v1465_v46  }
 0x266   : > { %1047 = vset.pattern.permute.xlu2 %v1256_v33 }
 0x267   : > { %505 = vperm.xlu2 %1047, %v1468_v47  }
 0x26f   : > { %1048 = vset.pattern.permute.xlu2 %v1257_v41 }
 0x2a0   : > { %v571_v50 = vpop.xlane.xlu2 %570 }
 0x2a1   : > { %v572_v51 = vmax.f32 %v1417_v12, %v571_v50 }
 0x2a3   : > { %v716_v53 = vsel %vm715_vm6, %v714_v52, %v572_v51  ;;  %578 = vperm.xlu1 %1044, %v572_v51   ;;  %v573_v5 = vsub.f32 %v1417_v12, %v572_v51 }
 0x2a4   : > { %v718_v54 = vsel %vm717_vm7, %v716_v53, %v1455_v40 }
 0x2a5   : > { %720 = vst.msk [vmem:[#allocation2] sm:$0xff] %vm337_vm1, %v718_v54  ;;  %v574_v6 = vmul.f32 1.442695, %v573_v5  ;;  %v375_v54 = vld [vmem:[#allocation4] sm:$0xff] }
 0x2a8   : > { %v492_v55 = vpop.permute.xlu2 %491 }
 0x2a9   : > { %v494_v56 = vsub.f32 %v1423_v15, %v492_v55 }
 0x2ab   : > { %v495_v57 = vmul.f32 1.442695, %v494_v56  ;;  %596 = vrot.lane.b32.xlu1 %v1428_v17, %s1251_s4 }
 0x2ad   : > { %1060 = vpow2.f32 %v495_v57 }
 0x2b0   : > { %v665_v58 = vpop.permute.xlu2 %664 }
 0x2b1   : > { %v667_v59 = vsub.f32 %v1432_v27, %v665_v58  ;;  %v419_v27 = vmul.f32 %v1465_v46, %v374_v26 }
 0x2b3   : > { %v1061_v60 = vpop.eup %1060  ;;  %v668_v61 = vmul.f32 1.442695, %v667_v59 }
 0x2b4   : > { %v497_v62 = vmul.f32 %v1061_v60, %v1437_v29 }
 0x2b5   : > { %1062 = vpow2.f32 %v668_v61 }
 0x2b6   : > { %947 = vmatmul.msk.f32.vlgmr.msra.gmra.mxu3 %vm376_vm0, %v497_v62  ;;  %v499_v63 = vsel %vm376_vm0, %v497_v62, 0.0  ;;  %1064 = vpow2.f32 %v574_v6 }
 0x2b7   : > { %500 = vadd.xlane.f32.xlu0 %v499_v63 }
 0x2b8   : > { %v683_v0 = vpop.permute.xlu2 %682 }
 0x2b9   : > { %703 = vmatpush.msrb.mxu2 %v683_v0 }
 0x2bb   : > { %v1063_v1 = vpop.eup %1062 }
 0x2bc   : > { %v670_v2 = vmul.f32 %v1063_v1, %v1437_v29  ;;  %v1065_v8 = vpop.eup %1064 }
 0x2bd   : > { %v585_v31 = vmul.f32 %v1065_v8, %v374_v26 }
 0x2be   : > { %953 = vmatmul.msk.f32.vlgmr.msrb.gmra.mxu2 %vm376_vm0, %v670_v2  ;;  %v672_v4 = vsel %vm376_vm0, %v670_v2, 0.0 }
 0x2c0   : > { %v427_v22 = vpop.permute.xlu2 %426 }
 0x2c1   : > { %v429_v57 = vmul.f32 %v427_v22, %v375_v54 }
 0x2c3   : > { %v453_v63 = vadd.f32 %v1447_v34, %v429_v57 }
 0x2c8   : > { %v506_v23 = vpop.permute.xlu2 %505 }
 0x2c9   : > { %v508_v58 = vmul.f32 %v506_v23, %v375_v54 }
 0x2d5   : > { %421 = vadd.xlane.f32.xlu1 %v420_v3 }
 0x2dd   : > { %673 = vadd.xlane.f32.xlu1 %v672_v4 }
 0x2f6   : > { %592 = vperm.xlu1 %1044, %v1065_v8  }
 0x2fe   : > { %1049 = vset.pattern.permute.xlu1 %v1254_v7  ;;  %v659_v7 = vsub.f32 %v1417_v12, %v1455_v40  ;;  %v498_v12 = vmul.f32 %v1468_v47, %v374_v26 }
 0x300   : > { %v660_v18 = vmul.f32 1.442695, %v659_v7 }
 0x315   : > { %v579_v9 = vpop.permute.xlu1 %578 }
 0x316   : > { %v581_v10 = vsub.f32 %v1449_v35, %v579_v9 }
 0x318   : > { %v582_v11 = vmul.f32 1.442695, %v581_v10 }
 0x31a   : > { %1066 = vpow2.f32 %v582_v11 }
 0x31b   : > { %1068 = vpow2.f32 %v660_v18 }
 0x31d   : > { %v597_v13 = vpop.permute.xlu1 %596 }
 0x31e   : > { %617 = vmatpush.msrb.mxu3 %v597_v13 }
 0x320   : > { %v1067_v14 = vpop.eup %1066 }
 0x321   : > { %v584_v15 = vmul.f32 %v1067_v14, %v1437_v29  ;;  %v1069_v19 = vpop.eup %1068 }
 0x322   : > { %v671_v33 = vmul.f32 %v1069_v19, %v374_v26 }
 0x323   : > { %950 = vmatmul.msk.f32.vlgmr.msrb.gmra.mxu3 %vm376_vm0, %v584_v15  ;;  %v586_v17 = vsel %vm376_vm0, %v584_v15, 0.0 }
 0x32a   : > { %v501_v28 = vpop.xlane.xlu0 %500 }
 0x32b   : > { %v502_v32 = vadd.f32 %v501_v28, %v498_v12 }
 0x339   : > { %v533_v16 = vpop.f32.mrf.mxu3 }
 0x33a   : > { %537 = vrot.lane.b32.xlu2 %v533_v16, %s1259_s19 }
 0x341   : > { %v705_v21 = vpop.f32.mrf.mxu2 }
 0x348   : > { %v422_v24 = vpop.xlane.xlu1 %421 }
 0x349   : > { %v423_v29 = vadd.f32 %v422_v24, %v419_v27 }
 0x34b   : > { %v721_v37 = vsel %vm713_vm5, %v423_v29, %v502_v32 }
 0x350   : > { %v674_v30 = vpop.xlane.xlu1 %673 }
 0x351   : > { %v675_v38 = vadd.f32 %v674_v30, %v671_v33 }
 0x363   : > { %587 = vadd.xlane.f32.xlu2 %v586_v17 }
 0x368   : > { %v593_v56 = vpop.permute.xlu1 %592 }
 0x369   : > { %v595_v59 = vmul.f32 %v593_v56, %v375_v54 }
 0x37b   : > { %678 = vperm.xlu2 %1048, %v1069_v19  }
 0x394   : > { %v538_v25 = vpop.permute.xlu2 %537 }
 0x395   : > { %v540_v61 = vadd.f32 %v538_v25, %v508_v58 }
 0x3a6   : > { %v619_v20 = vpop.f32.mrf.mxu3 }
 0x3a7   : > { %623 = vrot.lane.b32.xlu0 %v619_v20, %s1260_s21 }
 0x3af   : > { %709 = vrot.lane.b32.xlu0 %v705_v21, %s1261_s23 }
 0x3d6   : > { %v588_v35 = vpop.xlane.xlu2 %587 }
 0x3d7   : > { %v589_v36 = vadd.f32 %v588_v35, %v585_v31 }
 0x3d9   : > { %v722_v39 = vsel %vm715_vm6, %v721_v37, %v589_v36 }
 0x3da   : > { %v723_v40 = vsel %vm717_vm7, %v722_v39, %v675_v38 }
 0x3db   : > { %724 = vst.msk [vmem:[#allocation3] sm:$0xff] %vm337_vm1, %v723_v40 }
 0x3de   : > { %v679_v60 = vpop.permute.xlu2 %678 }
 0x3df   : > { %v681_v0 = vmul.f32 %v679_v60, %v375_v54 }
 0x3e2   : > { %v736_v42 = vld [vmem:[#allocation3] sm:$0xff] }
 0x3e3   : > { %1070 = vrcp.f32 %v736_v42  ;;  %v748_v46 = vand.u32 2147483648, %v736_v42  ;;  %v746_v49 = vand.u32 2147483647, %v736_v42  ;;  %vm742_vm9 = vweird.f32 %v736_v42 }
 0x3e5   : > { %v749_v51 = vor.u32 1.1754944e-38, %v748_v46  ;;  %vm747_vm11 = vcmp.eq.f32.partialorder %v746_v49, 8.507059e+37 }
 0x3e9   : > { %v1071_v43 = vpop.eup %1070 }
 0x3ea   : > { %v738_v44 = vmul.f32 %v1071_v43, %v736_v42  ;;  %vm743_vm8 = vweird.f32 %v1071_v43 }
 0x3eb   : > { %vm744_vm10 = vmor %vm742_vm9, %vm743_vm8 }
 0x3ec   : > { %v739_v45 = vsub.f32 1.0, %v738_v44 }
 0x3ee   : > { %v740_v47 = vmul.f32 %v1071_v43, %v739_v45 }
 0x3f0   : > { %v741_v50 = vadd.f32 %v1071_v43, %v740_v47 }
 0x3f2   : > { %v745_v52 = vsel %vm744_vm10, %v1071_v43, %v741_v50 }
 0x3f3   : > { %v750_v53 = vsel %vm747_vm11, %v749_v51, %v745_v52 }
 0x3f4   : > { %759 = vperm.xlu0 %1050, %v750_v53   ;;  %754 = vperm.xlu1 %1049, %v750_v53  }
 0x3fc   : > { %1051 = vset.pattern.permute.xlu1 %v1258_v48  ;;  %1053 = vset.pattern.permute.xlu0 %v1257_v41 }
 0x3fd   : > { %764 = vperm.xlu1 %1051, %v750_v53  }
 0x405   : > { %1052 = vset.pattern.permute.xlu1 %v1257_v41  ;;  %v725_v41 = vsel %vm376_vm0, %v453_v63, %v540_v61 }
 0x406   : > { %769 = vperm.xlu1 %1052, %v750_v53  }
 0x419   : > { %v624_v55 = vpop.permute.xlu0 %623 }
 0x41a   : > { %v626_v62 = vadd.f32 %v624_v55, %v595_v59 }
 0x41c   : > { %v727_v2 = vsel %vm726_vm12, %v725_v41, %v626_v62 }
 0x421   : > { %v710_v48 = vpop.permute.xlu0 %709 }
 0x422   : > { %v712_v1 = vadd.f32 %v710_v48, %v681_v0 }
 0x424   : > { %v729_v3 = vsel %vm728_vm13, %v727_v2, %v712_v1 }
 0x425   : > { %731 = vst.msk [vmem:[#allocation4] sm:$0xff] %vm340_vm4, %v729_v3 }
 0x42c   : > { %v735_v8 = vld [vmem:[#allocation4] sm:$0xff] }
 0x466   : > { %v755_v4 = vpop.permute.xlu1 %754  ;;  %v760_v6 = vpop.permute.xlu0 %759 }
 0x467   : > { %v762_v34 = vmul.f32 %v760_v6, %v735_v8  ;;  %v757_v9 = vmul.f32 %v755_v4, %v735_v8 }
 0x469   : > { %v774_v13 = vsel %vm376_vm0, %v757_v9, %v762_v34 }
 0x46f   : > { %v765_v5 = vpop.permute.xlu1 %764 }
 0x470   : > { %v767_v10 = vmul.f32 %v765_v5, %v735_v8 }
 0x472   : > { %v776_v15 = vsel %vm726_vm12, %v774_v13, %v767_v10 }
 0x478   : > { %v770_v11 = vpop.permute.xlu1 %769 }
 0x479   : > { %v772_v14 = vmul.f32 %v770_v11, %v735_v8 }
 0x47b   : > { %v778_v16 = vsel %vm728_vm13, %v776_v15, %v772_v14 }
 0x47c   : > { %780 = vst.msk [vmem:[%s322_s5] sm:$0xff] %vm340_vm4, %v778_v16 }
 0x47d   : > { %1189 = shalt.err (!%p1186_p13)
}
 0x47e   : > { %964 = dma.vmem_to_hbm [thread:$0]  (%p1337_p9), %s796_s9, 128, %s798_s11, %s782_s15  }
 0x47f PF: > { %s809_s22 = sand.u32 1, %s1228_s12   ;;  %p977_p0 = pnand %p929_p12, %p1344_p11 }
 0x480   : > { %s810_s4 = scalar_lea.sflag [#allocation7], %s809_s22 }
 0x481   : > { %p978_p1 = pneg %p977_p0 }
 0x483   : > { %1223 = dma.done.wait (%p978_p1), %s810_s4, 128  }
 0x484   : > { %1225 = vsyncadd (%p978_p1), %s810_s4, 4294967168  ;;  %s22_s17 = sadd.s32 1, %s1248_s17   ;;  %s1576_s18 = sld [smem:[#allocation17_spill]] }
 0x485   : > { %p19_p2 = scmp.ge.s32.totalorder %s22_s17, 4   ;;  %s1577_s15 = sld [smem:[#allocation15_spill]] }
 0x486   : > { %s1578_s16 = sld [smem:[#allocation16_spill]]  ;;  %s1579_s12 = smov %s1232_s13 }
 0x487   : > { %s1580_s13 = smov %s1236_s14  ;;  %21 = sbr.rel (!%p19_p2) target bundleno = 10 (0xa), region = 113 }
 0x48a   : > { %s1581_s14 = smov %s1576_s18 }
 0x48c   :  { %816 = vsyncpa [#allocation6], 1 }
 0x48d   :  { %818 = vsyncpa [#allocation6 + $0x1], 1 }
 0x48e   :  { %819 = vsyncpa [#allocation9], 1 }
 0x48f   :  { %821 = vsyncpa [#allocation9 + $0x1], 1 }
 0x490   :  { %822 = vsyncpa [#allocation7], 1 }
 0x491   :  { %824 = vsyncpa [#allocation7 + $0x1], 1 }

</bundles_post_ra>
